<compile_context>
chip_gen: v5e
topology: v5e:2x2
jax: 0.10.0
libtpu: 0.0.40
codegen_flags: <defaults>
</compile_context>

<pallas_src>
import functools
import math
from itertools import combinations

import jax
import jax.numpy as jnp
from jax.experimental import pallas as pl
from jax.experimental.pallas import tpu as pltpu


_VMEM_LIMIT = 32 * 1024 * 1024      # scoped-VMEM request (safe on v5e/v6e/v7x)
_VMEM_BUDGET = 24 * 1024 * 1024     # tile-selection budget (headroom under limit)


def _round_up(x, m):
    return ((x + m - 1) // m) * m


# --------------------------------- kernels -----------------------------------
def _linear_1d_kernel(x_ref, w_ref, b_ref, o_ref, *, apply_relu, cast_bf16):
    """o = [relu](x @ w + b); W/b blocks are grid-invariant (VMEM-resident)."""
    x = x_ref[...]
    w = w_ref[...]
    if cast_bf16:                         # cast in-VMEM; x arrives from HBM as f32
        x = x.astype(jnp.bfloat16)
        w = w.astype(jnp.bfloat16)
    out = jnp.dot(x, w, preferred_element_type=jnp.float32) + b_ref[...]
    if apply_relu:
        out = jnp.maximum(out, 0.0)
    o_ref[...] = out.astype(o_ref.dtype)


def _linear_3d_kernel(x_ref, w_ref, b_ref, o_ref, acc_ref, *, apply_relu,
                      cast_bf16):
    """General tiled path: f32 accumulator over the K grid axis (axis 2)."""
    @pl.when(pl.program_id(2) == 0)
    def _():
        acc_ref[...] = jnp.zeros_like(acc_ref)

    x = x_ref[...]
    w = w_ref[...]
    if cast_bf16:
        x = x.astype(jnp.bfloat16)
        w = w.astype(jnp.bfloat16)
    acc_ref[...] += jnp.dot(x, w, preferred_element_type=jnp.float32)

    @pl.when(pl.program_id(2) == pl.num_programs(2) - 1)
    def _():
        out = acc_ref[...] + b_ref[...]
        if apply_relu:
            out = jnp.maximum(out, 0.0)
        o_ref[...] = out.astype(o_ref.dtype)


# ------------------------------ tile selection --------------------------------
def _fits_1d(M, K, N):
    """Can full-K, full-N blocks (plus >=128-row x/out tiles) fit the budget?"""
    fixed = 2 * (K * N * 4 + N * 4)                 # double-buffered W (<=f32) + bias
    rows = min(M, 128)
    return fixed + 2 * rows * (K + N) * 4 <= _VMEM_BUDGET


def _choose_tm_1d(M, K, N):
    if M <= 8:
        return M
    fixed = 2 * (K * N * 4 + N * 4)
    per_row = 2 * (K * 4 + N * 4)                   # double-buffered f32 x row + out row
    cap = max(8, (_VMEM_BUDGET - fixed) // per_row)
    tm = min(4096, cap)
    tm = min(tm, _round_up(pl.cdiv(M, 2), 8))       # >=2 M blocks for v7x's 2 TCs
    tm = max(8, (tm // 8) * 8)
    return M if tm >= M else tm


def _pick_tile_128(dim, pref):
    """Largest multiple-of-128 divisor of dim that is <= pref; else the full dim."""
    if dim <= pref:
        return dim
    t = (pref // 128) * 128
    while t >= 128:
        if dim % t == 0:
            return t
        t -= 128
    return dim


# ------------------------------ fused linear ----------------------------------
def pallas_linear(x, w, b, *, apply_relu, cast_bf16=True):
    """x: (M, K) f32, w: (K, N) f32/bf16, b: (1, N) f32 -> (M, N) f32."""
    M, K = x.shape
    K2, N = w.shape
    assert K == K2, (K, K2)
    assert b.shape == (1, N), b.shape
    w_bytes = K * N * w.dtype.itemsize

    if _fits_1d(M, K, N):
        # ---- 1-D grid over M: no accumulator, no pl.when, resident W/bias ----
        tm = _choose_tm_1d(M, K, N)
        cost = pl.CostEstimate(
            flops=2 * M * K * N, transcendentals=0,
            bytes_accessed=M * K * 4 + w_bytes + N * 4 + M * N * 4)
        return pl.pallas_call(
            functools.partial(_linear_1d_kernel, apply_relu=apply_relu,
                              cast_bf16=cast_bf16),
            out_shape=jax.ShapeDtypeStruct((M, N), jnp.float32),
            grid=(pl.cdiv(M, tm),),
            in_specs=[
                pl.BlockSpec((tm, K), lambda i: (i, 0)),
                pl.BlockSpec((K, N), lambda i: (0, 0)),    # fetched once, resident
                pl.BlockSpec((1, N), lambda i: (0, 0)),    # fetched once, resident
            ],
            out_specs=pl.BlockSpec((tm, N), lambda i: (i, 0)),
            compiler_params=pltpu.CompilerParams(
                dimension_semantics=("parallel",),
                vmem_limit_bytes=_VMEM_LIMIT),
            cost_estimate=cost,
        )(x, w, b)

    # ---- general 3-D grid (large K and/or N) ----
    tn = _pick_tile_128(N, 512)
    tk = _pick_tile_128(K, 512)
    assert K % tk == 0, "reduction tiles must divide K exactly"
    fixed = 2 * (tk * tn * w.dtype.itemsize + tn * 4)
    per_row = 2 * (tk * 4 + tn * 4) + tn * 4               # + f32 accumulator scratch
    tm = min(512, max(8, (_VMEM_BUDGET - fixed) // per_row))
    tm = min(tm, _round_up(pl.cdiv(M, 2), 8))
    tm = max(8, (tm // 8) * 8)
    tm = M if tm >= M else tm
    gm, gn, gk = pl.cdiv(M, tm), pl.cdiv(N, tn), pl.cdiv(K, tk)
    cost = pl.CostEstimate(
        flops=2 * M * K * N, transcendentals=0,
        bytes_accessed=M * K * 4 * gn + w_bytes * gm + N * 4 + M * N * 4)
    return pl.pallas_call(
        functools.partial(_linear_3d_kernel, apply_relu=apply_relu,
                          cast_bf16=cast_bf16),
        out_shape=jax.ShapeDtypeStruct((M, N), jnp.float32),
        grid=(gm, gn, gk),
        in_specs=[
            pl.BlockSpec((tm, tk), lambda i, j, k: (i, k)),
            pl.BlockSpec((tk, tn), lambda i, j, k: (k, j)),
            pl.BlockSpec((1, tn), lambda i, j, k: (0, j)),
        ],
        out_specs=pl.BlockSpec((tm, tn), lambda i, j, k: (i, j)),
        scratch_shapes=[pltpu.VMEM((tm, tn), jnp.float32)],
        compiler_params=pltpu.CompilerParams(
            dimension_semantics=("parallel", "parallel", "arbitrary"),
            vmem_limit_bytes=_VMEM_LIMIT),
        cost_estimate=cost,
    )(x, w, b)


# -------------------------------- param init ----------------------------------
def _init_linear(key, in_feat, out_feat):
    # PyTorch nn.Linear default init: U(-1/sqrt(in), 1/sqrt(in)).
    kw, kb = jax.random.split(key)
    bound = 1.0 / math.sqrt(in_feat)
    w = jax.random.uniform(kw, (in_feat, out_feat), jnp.float32, -bound, bound)
    b = jax.random.uniform(kb, (out_feat,), jnp.float32, -bound, bound)
    return w, b   # stored transposed (in_feat, out_feat) for x @ w


# ------------------------------- module wrapper --------------------------------
class AdvDomainClsBase:
    def __init__(self, in_feat, hidden_size, type_adv, args, key):
        self.num_f_maps = args["num_f_maps"]
        self.DA_adv_video = args["DA_adv_video"]
        self.pair_ssl = args["pair_ssl"]
        self.type_adv = type_adv
        self._ssl2 = (self.type_adv == "video"
                      and self.DA_adv_video == "rev_grad_ssl_2")
        k_pair, k_fc1 = jax.random.split(key)
        if self._ssl2:
            self.w_pair, self.b_pair = _init_linear(
                k_pair, self.num_f_maps * 2, self.num_f_maps)
        self.w1, self.b1 = _init_linear(k_fc1, in_feat, hidden_size)
        # Kernel-ready copies (cast once at init, not per call).
        self.w1_bf16 = self.w1.astype(jnp.bfloat16)
        self.b1_2d = self.b1.reshape(1, -1)
        self._fold_cache = {}

    def _pairs(self, num_seg):
        if self.pair_ssl == "adjacent":
            return [(i, i + 1) for i in range(num_seg - 1)]
        return list(combinations(range(num_seg), 2))

    def _folded_params(self, num_seg):
        """Fold pair-gather -> fc_pair -> reshape -> fc1 into one affine map.

        No activation between fc_pair and fc1 and the pair index set is static,
        so the ssl_2 branch is one linear map from the (num_seg*F,) features to
        hidden_size.  Folded in f32 (and kept f32 — accuracy) once per num_seg.
        """
        if num_seg in self._fold_cache:
            return self._fold_cache[num_seg]
        F = self.num_f_maps
        N = self.b1.shape[0]
        pairs = self._pairs(num_seg)
        assert self.w1.shape[0] == len(pairs) * F, (
            "fc1 in_feat must equal num_pairs * num_f_maps")
        wp_i = self.w_pair[:F]     # (F, F) half acting on segment i of a pair
        wp_j = self.w_pair[F:]     # (F, F) half acting on segment j of a pair
        w_comb = jnp.zeros((num_seg * F, N), jnp.float32)
        b_comb = self.b1
        for p, (i, j) in enumerate(pairs):
            w1_p = self.w1[p * F:(p + 1) * F]               # (F, N)
            w_comb = w_comb.at[i * F:(i + 1) * F].add(wp_i @ w1_p)
            w_comb = w_comb.at[j * F:(j + 1) * F].add(wp_j @ w1_p)
            b_comb = b_comb + self.b_pair @ w1_p
        params = (w_comb, b_comb.reshape(1, -1))            # f32 (no bf16 cast)
        self._fold_cache[num_seg] = params
        return params

    def __call__(self, input_data, beta):
        # GradRevLayer.forward(x, beta) == x (beta only scales backward grads).
        del beta
        x = jnp.asarray(input_data, jnp.float32)
        if self._ssl2:
            num_seg = x.shape[-1] // self.num_f_maps
            w, b = self._folded_params(num_seg)
            x2d = x.reshape(-1, num_seg * self.num_f_maps)
            # f32 MXU pass (cast_bf16=False): keeps folded-weight accuracy; the
            # video-level M is tiny so the extra MXU passes are negligible.
            return pallas_linear(x2d, w, b, apply_relu=True, cast_bf16=False)
        lead = x.shape[:-1]
        x2d = x.reshape(-1, x.shape[-1])
        # TODO(synk): in real pipelines, bucket/pad M (rows) to a small set of
        #             sizes to avoid per-shape recompiles of the pallas_call.
        out = pallas_linear(x2d, self.w1_bf16, self.b1_2d, apply_relu=True)
        # dropout: identity (eval mode)
        return out.reshape(*lead, -1)


# --------------------------------- reference -----------------------------------
def _reference(module, x):
    """Pure-JAX f32 mirror of the original PyTorch forward (un-folded)."""
    feat = x
    if module._ssl2:
        F = module.num_f_maps
        num_seg = x.shape[-1] // F
        feat = feat.reshape(-1, num_seg, F)
        id_pair = jnp.asarray(module._pairs(num_seg), dtype=jnp.int32)
        feat = feat[:, id_pair, :].reshape(-1, 2 * F)
        feat = feat @ module.w_pair + module.b_pair
        feat = feat.reshape(-1, id_pair.shape[0] * F)
    return jnp.maximum(feat @ module.w1 + module.b1, 0.0)


if __name__ == "__main__":
    key = jax.random.PRNGKey(0)
    k_in1, k_in2, k_in3, k_m1, k_m2, k_m3 = jax.random.split(key, 6)

    # --- case 1: "frame"-level domain classifier (fc1 + ReLU path) ---
    args_frame = dict(num_f_maps=4, DA_adv_video="rev_grad", pair_ssl="all")
    mod_frame = AdvDomainClsBase(in_feat=32, hidden_size=16,
                                 type_adv="frame", args=args_frame, key=k_m1)
    x_frame = jax.random.normal(k_in1, (8, 32), jnp.float32)
    y_frame = mod_frame(x_frame, beta=0.5)
    jax.block_until_ready(y_frame)
    assert y_frame.shape == (8, 16)

    # --- case 2: "video"-level classifier with rev_grad_ssl_2 pair path ---
    # num_seg=4 segments of num_f_maps=4 -> 6 pairs -> fc1 in_feat = 6*4 = 24
    args_video = dict(num_f_maps=4, DA_adv_video="rev_grad_ssl_2", pair_ssl="all")
    mod_video = AdvDomainClsBase(in_feat=24, hidden_size=16,
                                 type_adv="video", args=args_video, key=k_m2)
    x_video = jax.random.normal(k_in2, (2, 16), jnp.float32)
    y_video = mod_video(x_video, beta=0.5)
    jax.block_until_ready(y_video)
    assert y_video.shape == (2, 16)

    # --- case 3: larger frame batch -> exercises multi-block 1-D M grid ---
    mod_big = AdvDomainClsBase(in_feat=64, hidden_size=16,
                               type_adv="frame", args=args_frame, key=k_m3)
    x_big = jax.random.normal(k_in3, (600, 64), jnp.float32)
    y_big = mod_big(x_big, beta=1.0)
    jax.block_until_ready(y_big)
    assert y_big.shape == (600, 16)

    # Numerical checks vs the f32 reference.
    ref1 = _reference(mod_frame, x_frame)
    ref2 = _reference(mod_video, x_video)
    ref3 = _reference(mod_big, x_big)
    # frame path uses bf16 MXU inputs with f32 accumulation -> bf16 tolerance
    assert jnp.allclose(y_frame, ref1, atol=3e-2, rtol=3e-2), (
        "frame path mismatch:", float(jnp.max(jnp.abs(y_frame - ref1))))
    assert jnp.allclose(y_big, ref3, atol=3e-2, rtol=3e-2), (
        "big frame path mismatch:", float(jnp.max(jnp.abs(y_big - ref3))))
    # video (folded, f32 MXU) path -> tight tolerance
    assert jnp.allclose(y_video, ref2, atol=1e-3, rtol=1e-3), (
        "video path mismatch:", float(jnp.max(jnp.abs(y_video - ref2))))

    print("KERNEL_OK")
</pallas_src>

<mosaic_0001>
module attributes {stable_mosaic.version = 11 : i64} {
  func.func @_linear_1d_kernel(%arg0: i32, %arg1: memref<8x32xf32, #tpu.memory_space<vmem>>, %arg2: memref<32x16xbf16, #tpu.memory_space<vmem>>, %arg3: memref<1x16xf32, #tpu.memory_space<vmem>>, %arg4: memref<8x16xf32, #tpu.memory_space<vmem>>) attributes {dimension_semantics = [#tpu.dimension_semantics<parallel>], iteration_bounds = array<i64: 1>, scalar_prefetch = 0 : i64, scratch_operands = 0 : i64, tpu.core_type = #tpu.core_type<tc>, window_params = [{transform_indices = @transform_0, window_bounds = array<i64: 8, 32>}, {pipeline_mode = #tpu.pipeline_mode<synchronous>, transform_indices = @transform_1, window_bounds = array<i64: 32, 16>}, {pipeline_mode = #tpu.pipeline_mode<synchronous>, transform_indices = @transform_2, window_bounds = array<i64: 1, 16>}, {transform_indices = @transform_3, window_bounds = array<i64: 8, 16>}]} {
    %c0 = arith.constant 0 : index
    %c0_0 = arith.constant 0 : index
    %0 = vector.load %arg1[%c0, %c0_0] : memref<8x32xf32, #tpu.memory_space<vmem>>, vector<8x32xf32>
    %c0_1 = arith.constant 0 : index
    %c0_2 = arith.constant 0 : index
    %1 = vector.load %arg2[%c0_1, %c0_2] : memref<32x16xbf16, #tpu.memory_space<vmem>>, vector<32x16xbf16>
    %2 = arith.truncf %0 : vector<8x32xf32> to vector<8x32xbf16>
    %cst = arith.constant dense<0.000000e+00> : vector<8x16xf32>
    %3 = tpu.matmul %2, %1, %cst {dimension_numbers = #tpu.dot_dimension_numbers<[1], [0], [0], [1], [0, 0, 1, 1], [], []>} : vector<8x32xbf16>, vector<32x16xbf16>, vector<8x16xf32> -> vector<8x16xf32>
    %c0_3 = arith.constant 0 : index
    %c0_4 = arith.constant 0 : index
    %4 = vector.load %arg3[%c0_3, %c0_4] : memref<1x16xf32, #tpu.memory_space<vmem>>, vector<1x16xf32>
    %5 = vector.broadcast %4 : vector<1x16xf32> to vector<8x16xf32>
    %6 = arith.addf %3, %5 : vector<8x16xf32>
    %cst_5 = arith.constant 0.000000e+00 : f32
    %7 = vector.broadcast %cst_5 : f32 to vector<8x16xf32>
    %8 = arith.maximumf %6, %7 : vector<8x16xf32>
    %c0_6 = arith.constant 0 : index
    %c0_7 = arith.constant 0 : index
    %9 = vector.load %arg4[%c0_6, %c0_7] : memref<8x16xf32, #tpu.memory_space<vmem>>, vector<8x16xf32>
    tpu.vector_store %arg4[%c0_6, %c0_7], %8 {strides = array<i32>} : memref<8x16xf32, #tpu.memory_space<vmem>>, vector<8x16xf32>,
    return
  }
  func.func @transform_0(%arg0: i32) -> (i32, i32) {
    %c0_i32 = arith.constant 0 : i32
    %c0_i32_0 = arith.constant 0 : i32
    return %arg0, %c0_i32 : i32, i32
  }
  func.func @transform_1(%arg0: i32) -> (i32, i32) {
    %c0_i32 = arith.constant 0 : i32
    %c0_i32_0 = arith.constant 0 : i32
    %c0_i32_1 = arith.constant 0 : i32
    return %c0_i32, %c0_i32_0 : i32, i32
  }
  func.func @transform_2(%arg0: i32) -> (i32, i32) {
    %c0_i32 = arith.constant 0 : i32
    %c0_i32_0 = arith.constant 0 : i32
    %c0_i32_1 = arith.constant 0 : i32
    return %c0_i32, %c0_i32_0 : i32, i32
  }
  func.func @transform_3(%arg0: i32) -> (i32, i32) {
    %c0_i32 = arith.constant 0 : i32
    %c0_i32_0 = arith.constant 0 : i32
    return %arg0, %c0_i32 : i32, i32
  }
}

</mosaic_0001>

<bundles_post_ra>
// kernel: tpu_custom_call.1
= control target key start
LH: loop header
LB: loop body
LE: loop exit
PB: predicated region body
PF: predicated region fallthrough
CT: control target
= control target key end

     0   :  { %s149_s0 = inlined_call_operand.vmem [shape: f32[8,32], index: 0, kind: input, shape index: {}]   ;;  %s150_s1 = inlined_call_operand.vmem [shape: bf16[32,16], index: 1, kind: input, shape index: {}]   ;;  %s151_s2 = inlined_call_operand.vmem [shape: f32[1,16], index: 2, kind: input, shape index: {}]   ;;  %s152_s3 = inlined_call_operand.hbm [shape: f32[8,16], index: 3, kind: output, shape index: {}]  }
   0x1   :  { %v84_v0 = vld [vmem:[%s150_s1 + $0x8] sm:$0xff] }
   0x2   :  { %8 = vsyncpa [#allocation3], 0  ;;  %48 = vmatpush.bf16.msra.mxu0 %v84_v0  ;;  %v83_v1 = vld [vmem:[%s150_s1] sm:$0xff]  ;;  %vm38_vm0 = vcmask 261120   ;;  %s113_s20 = smov [#allocation2]   ;;  %s65_s24 = sshll.u32 %s152_s3, 4  ;;  %s66_s24 = int_to_ptr.hbm [resolvable:$true] %s65_s24 }
   0x3   :  { %v16_v2 = vld [vmem:[%s149_s0] sm:$0xff]  ;;  %s63_s21 = sshll.u32 %s113_s20, 4  ;;  %vm56_vm1 = vcmask 130048   ;;  %s64_s21 = int_to_ptr.vmem [resolvable:$true] %s63_s21 }
   0x4   :  { %v21_v3 = vpack.c.bf16 %v16_v2, %v16_v2  ;;  %v86_v4 = vld [vmem:[%s151_s2] ss:$0 sm:$0xff] }
   0x6   :  { %49 = vmatpush.bf16.msra.mxu0 %v83_v1 }
   0x9   :  { %82 = vmatmul.msk.bf16.vlgmr.msra.gmra.mxu0 %vm38_vm0, %v21_v3 }
  0x86   :  { %v51_v5 = vpop.f32.mrf.mxu0 }
  0x87   :  { %v52_v6 = vadd.f32 %v86_v4, %v51_v5 }
  0x89   :  { %v55_v7 = vmax.f32 %v52_v6, 0.0 }
  0x8b   :  { %57 = vst.msk [vmem:[#allocation2] sm:$0xff] %vm56_vm1, %v55_v7 }
  0x8c   :  { %68 = dma.vmem_to_hbm [thread:$0]  %s64_s21, 128, %s66_s24, [#allocation3]  }
  0x8e   :  { %v53_v8 = vpop.f32.mrf.mxu0 }
  0x8f   :  { %111 = dma.done.wait [#allocation3], 128  }
  0x90   :  { %112 = vsyncadd [#allocation3], 4294967168 }
  0x91   :  { %73 = vsyncpa [#allocation3], 1 }

</bundles_post_ra>
